<compile_context>
chip_gen: v7x
topology: tpu7x:2x2x1
jax: 0.10.0
libtpu: 0.0.40
codegen_flags: <defaults>
</compile_context>

<pallas_src>
import math
import jax
import jax.numpy as jnp
from jax.experimental import pallas as pl
from jax.experimental.pallas import tpu as pltpu

# ----------------------------- configuration -----------------------------
C_IN = 4
D_MODEL = 32
SEQ_LEN = 16
BATCH = 2
CAL_VARS = ("month", "dayweek", "hour")
FREQ_MAP = {"month": 13, "dayweek": 8, "day": 6, "hour": 25, "minute": 61}
CAL_SIZES = tuple(FREQ_MAP[v] for v in CAL_VARS)     # (13, 8, 25)
CAL_TOTAL = sum(CAL_SIZES)                           # 46
N_VARS = len(CAL_VARS)
K = 3                                                # conv kernel size
POS_OFF = CAL_TOTAL                                  # position one-hot offset inside onehot block
K_RAW = K * C_IN + CAL_TOTAL + SEQ_LEN               # 74
K_TOT = ((K_RAW + 7) // 8) * 8                       # 80 (pad contraction dim to mult of 8)
OH_W = K_TOT - K * C_IN                              # 68 (one-hot block width incl. dead pad cols)


# ----------------------------- parameter setup (host-side glue) -----------------------------
def sinusoidal_table(n_pos, d_model):
    """PyTorch-style fixed sinusoidal table, shape (n_pos, d_model)."""
    position = jnp.arange(n_pos, dtype=jnp.float32)[:, None]
    div_term = jnp.exp(jnp.arange(0, d_model, 2, dtype=jnp.float32)
                       * -(math.log(10000.0) / d_model))
    tab = jnp.zeros((n_pos, d_model), jnp.float32)
    tab = tab.at[:, 0::2].set(jnp.sin(position * div_term))
    tab = tab.at[:, 1::2].set(jnp.cos(position * div_term))
    return tab


def make_params(key):
    # TokenEmbedding conv weight (d_model, c_in, 3), kaiming_normal_(fan_in, leaky_relu)
    fan_in = C_IN * K
    gain = math.sqrt(2.0 / (1.0 + 0.01 ** 2))
    std = gain / math.sqrt(fan_in)
    w_conv = jax.random.normal(key, (D_MODEL, C_IN, K), jnp.float32) * std
    # matmul form of the circular conv: rows ordered k=0 (prev), k=1 (center), k=2 (next)
    w_flat = jnp.concatenate([w_conv[:, :, k].T for k in range(K)], axis=0)   # (12, d_model)

    tables = [sinusoidal_table(sz, D_MODEL) for sz in CAL_SIZES]              # 13 / 8 / 25 rows
    pe = sinusoidal_table(SEQ_LEN, D_MODEL)                                   # (L, d_model)

    pad = jnp.zeros((K_TOT - K_RAW, D_MODEL), jnp.float32)                    # dead K padding
    w_big = jnp.concatenate([w_flat, *tables, pe, pad], axis=0)               # (K_TOT, d_model)
    return w_flat, pe, w_big


# ----------------------------- Pallas kernel -----------------------------
def data_embedding_kernel(x_ref, m_ref, w_ref, out_ref):
    # x_ref  : (rows, C_IN)    value features (rows = whole number of sequences)
    # m_ref  : (rows, N_VARS)  calendar features, pre-normalized to [0, 1]
    # w_ref  : (K_TOT, D_MODEL) fused [w_flat ; cal tables ; pe ; zero pad]
    # out_ref: (rows, D_MODEL)
    rows = x_ref.shape[0]
    xv = x_ref[...]                                                           # (rows, C_IN)
    xm = m_ref[...]                                                           # (rows, N_VARS)

    # --- per-sequence circular shift (+-1 along seq) via XLU rolls + boundary selects ---
    pos_c = jax.lax.broadcasted_iota(jnp.int32, (rows, C_IN), 0) % SEQ_LEN
    is_first = pos_c == 0
    is_last = pos_c == SEQ_LEN - 1
    # x_prev[r] = xv[r-1] within a sequence; sequence-start rows wrap to the sequence end.
    x_prev = jnp.where(is_first,
                       pltpu.roll(xv, (1 - SEQ_LEN) % rows, axis=0),
                       pltpu.roll(xv, 1, axis=0))
    # x_next[r] = xv[r+1] within a sequence; sequence-end rows wrap to the sequence start.
    x_next = jnp.where(is_last,
                       pltpu.roll(xv, (SEQ_LEN - 1) % rows, axis=0),
                       pltpu.roll(xv, rows - 1, axis=0))
    x3 = jnp.concatenate([x_prev, xv, x_next], axis=-1)                       # (rows, 3*C_IN)

    # --- one-hot block built directly at final offsets: [month|dayweek|hour|position|pad] ---
    col = jax.lax.broadcasted_iota(jnp.int32, (rows, OH_W), 1)
    pos_oh = jax.lax.broadcasted_iota(jnp.int32, (rows, OH_W), 0) % SEQ_LEN
    hit = col == (pos_oh + POS_OFF)                                           # positional one-hot
    off = 0
    for i, size in enumerate(CAL_SIZES):                                      # static unroll (3)
        # x[:, :, i] *= freq_map[var]-1 ; x = x.long(); clamp to valid table rows.
        # NOTE: assumes calendar features are pre-normalized to [0, 1] by the data pipeline.
        xi = xm[:, i:i + 1]                                                   # (rows, 1)
        idx = jnp.clip((xi * float(size - 1)).astype(jnp.int32), 0, size - 1) + off
        hit = hit | (col == idx)
        off += size
    onehot = hit.astype(jnp.float32)                                          # (rows, OH_W)

    # --- single fused matmul: value + temporal + positional embeddings ---
    lhs = jnp.concatenate([x3, onehot], axis=-1)                              # (rows, K_TOT)
    out = jnp.dot(lhs, w_ref[...],
                  preferred_element_type=jnp.float32,
                  precision=jax.lax.Precision.HIGHEST)
    out_ref[...] = out.astype(out_ref.dtype)


# ----------------------------- wrapper -----------------------------
def data_embedding(x, x_mark, w_big, *, rows_per_block=None):
    """x: (B, L, c_in) float32, x_mark: (B, L, n_vars) float32 in [0, 1]."""
    B, L, _ = x.shape
    assert L == SEQ_LEN and SEQ_LEN % 8 == 0
    BL = B * L
    xr = x.reshape(BL, C_IN)                      # free bitcast, no extra XLA launch
    mr = x_mark.reshape(BL, N_VARS)               # free bitcast, no extra XLA launch

    if rows_per_block is None:
        # Whole-sequence row blocks, large enough to amortize the ~0.35 us per-step
        # overhead; workloads bigger than ~1024 rows split into >=2 "parallel" steps
        # (uses v7x's second TensorCore; no effect on v5e/v6e).
        target_rows = 1024
        rows_per_block = min(BL, max(SEQ_LEN, (target_rows // SEQ_LEN) * SEQ_LEN))
    while BL % rows_per_block != 0:               # shrink to a whole-sequence divisor of BL
        rows_per_block -= SEQ_LEN
    assert rows_per_block % SEQ_LEN == 0 and rows_per_block % 8 == 0
    grid = (BL // rows_per_block,)

    cost = pl.CostEstimate(
        flops=2 * BL * K_TOT * D_MODEL,
        transcendentals=0,
        bytes_accessed=4 * (xr.size + mr.size + w_big.size + BL * D_MODEL),
    )

    out = pl.pallas_call(
        data_embedding_kernel,
        out_shape=jax.ShapeDtypeStruct((BL, D_MODEL), jnp.float32),
        grid=grid,
        in_specs=[
            pl.BlockSpec((rows_per_block, C_IN), lambda i: (i, 0)),
            pl.BlockSpec((rows_per_block, N_VARS), lambda i: (i, 0)),
            pl.BlockSpec((K_TOT, D_MODEL), lambda i: (0, 0)),
        ],
        out_specs=pl.BlockSpec((rows_per_block, D_MODEL), lambda i: (i, 0)),
        compiler_params=pltpu.CompilerParams(dimension_semantics=("parallel",)),
        cost_estimate=cost,
    )(xr, mr, w_big)
    return out.reshape(B, L, D_MODEL)


# ----------------------------- pure-JAX reference -----------------------------
def data_embedding_ref(x, x_mark, w_flat, pe):
    x_unf = jnp.concatenate(
        [jnp.roll(x, 1, axis=1), x, jnp.roll(x, -1, axis=1)], axis=-1)
    val = jnp.einsum("blk,kd->bld", x_unf, w_flat,
                     precision=jax.lax.Precision.HIGHEST)
    temporal = jnp.zeros_like(val)
    for i, size in enumerate(CAL_SIZES):
        idx = (x_mark[:, :, i] * float(size - 1)).astype(jnp.int32)
        tab = sinusoidal_table(size, D_MODEL)
        temporal = temporal + jnp.take(tab, idx, axis=0)
    return val + temporal + pe[None]


# ----------------------------- main -----------------------------
if __name__ == "__main__":
    key = jax.random.PRNGKey(0)
    k_w, k_x, k_m, k_x2, k_m2 = jax.random.split(key, 5)

    w_flat, pe, w_big = make_params(k_w)

    # Small case (B=2, L=16): single grid step (launch-bound regime).
    x = jax.random.normal(k_x, (BATCH, SEQ_LEN, C_IN), jnp.float32)
    x_mark = jax.random.uniform(k_m, (BATCH, SEQ_LEN, N_VARS), jnp.float32)   # in [0, 1)

    out = jax.block_until_ready(data_embedding(x, x_mark, w_big))
    ref = data_embedding_ref(x, x_mark, w_flat, pe)
    assert out.shape == (BATCH, SEQ_LEN, D_MODEL)
    assert jnp.allclose(out, ref, atol=1e-4, rtol=1e-5)

    # Larger case (B=8): 2 "parallel" grid steps of 4 sequences each
    # (exercises the multi-step / v7x two-TensorCore path and the tile-local roll fixups).
    B2 = 8
    x2 = jax.random.normal(k_x2, (B2, SEQ_LEN, C_IN), jnp.float32)
    m2 = jax.random.uniform(k_m2, (B2, SEQ_LEN, N_VARS), jnp.float32)
    out2 = jax.block_until_ready(
        data_embedding(x2, m2, w_big, rows_per_block=4 * SEQ_LEN))
    ref2 = data_embedding_ref(x2, m2, w_flat, pe)
    assert out2.shape == (B2, SEQ_LEN, D_MODEL)
    assert jnp.allclose(out2, ref2, atol=1e-4, rtol=1e-5)

    print("KERNEL_OK")
</pallas_src>

<mosaic_0001>
module attributes {stable_mosaic.version = 11 : i64} {
  func.func @data_embedding_kernel(%arg0: i32, %arg1: memref<32x4xf32, #tpu.memory_space<vmem>>, %arg2: memref<32x3xf32, #tpu.memory_space<vmem>>, %arg3: memref<80x32xf32, #tpu.memory_space<vmem>>, %arg4: memref<32x32xf32, #tpu.memory_space<vmem>>) attributes {dimension_semantics = [#tpu.dimension_semantics<parallel>], iteration_bounds = array<i64: 1>, scalar_prefetch = 0 : i64, scratch_operands = 0 : i64, tpu.core_type = #tpu.core_type<tc>, window_params = [{transform_indices = @transform_0, window_bounds = array<i64: 32, 4>}, {transform_indices = @transform_1, window_bounds = array<i64: 32, 3>}, {pipeline_mode = #tpu.pipeline_mode<synchronous>, transform_indices = @transform_2, window_bounds = array<i64: 80, 32>}, {transform_indices = @transform_3, window_bounds = array<i64: 32, 32>}]} {
    %c0 = arith.constant 0 : index
    %c0_0 = arith.constant 0 : index
    %0 = vector.load %arg1[%c0, %c0_0] : memref<32x4xf32, #tpu.memory_space<vmem>>, vector<32x4xf32>
    %c0_1 = arith.constant 0 : index
    %c0_2 = arith.constant 0 : index
    %1 = vector.load %arg2[%c0_1, %c0_2] : memref<32x3xf32, #tpu.memory_space<vmem>>, vector<32x3xf32>
    %2 = tpu.iota {dimensions = array<i32: 0>} : vector<32x4xi32>
    %c16_i32 = arith.constant 16 : i32
    %c0_i32 = arith.constant 0 : i32
    %3 = arith.cmpi eq, %c16_i32, %c0_i32 : i32
    %c1_i32 = arith.constant 1 : i32
    %4 = arith.select %3, %c1_i32, %c16_i32 : i32
    %5 = vector.broadcast %4 : i32 to vector<32x4xi32>
    %6 = arith.remsi %2, %5 : vector<32x4xi32>
    %c0_i32_3 = arith.constant 0 : i32
    %7 = vector.broadcast %c0_i32_3 : i32 to vector<32x4xi32>
    %8 = arith.cmpi ne, %6, %7 : vector<32x4xi32>
    %c0_i32_4 = arith.constant 0 : i32
    %9 = vector.broadcast %c0_i32_4 : i32 to vector<32x4xi32>
    %10 = arith.cmpi slt, %6, %9 : vector<32x4xi32>
    %c0_i32_5 = arith.constant 0 : i32
    %11 = arith.cmpi slt, %4, %c0_i32_5 : i32
    %12 = vector.broadcast %11 : i1 to vector<32x4xi1>
    %13 = vector.broadcast %12 : vector<32x4xi1> to vector<32x4xi1>
    %14 = arith.xori %10, %13 : vector<32x4xi1>
    %15 = arith.andi %14, %8 : vector<32x4xi1>
    %16 = vector.broadcast %4 : i32 to vector<32x4xi32>
    %17 = arith.addi %6, %16 : vector<32x4xi32>
    %18 = arith.select %15, %17, %6 : vector<32x4xi1>, vector<32x4xi32>
    %c0_i32_6 = arith.constant 0 : i32
    %19 = vector.broadcast %c0_i32_6 : i32 to vector<32x4xi32>
    %20 = arith.cmpi eq, %18, %19 : vector<32x4xi32>
    %c15_i32 = arith.constant 15 : i32
    %21 = vector.broadcast %c15_i32 : i32 to vector<32x4xi32>
    %22 = arith.cmpi eq, %18, %21 : vector<32x4xi32>
    %c17_i32 = arith.constant 17 : i32
    %23 = tpu.dynamic_rotate %0 by %c17_i32 dim 0 : vector<32x4xf32>, i32 -> vector<32x4xf32>
    %c1_i32_7 = arith.constant 1 : i32
    %24 = tpu.dynamic_rotate %0 by %c1_i32_7 dim 0 : vector<32x4xf32>, i32 -> vector<32x4xf32>
    %25 = arith.select %20, %23, %24 : vector<32x4xi1>, vector<32x4xf32>
    %c15_i32_8 = arith.constant 15 : i32
    %26 = tpu.dynamic_rotate %0 by %c15_i32_8 dim 0 : vector<32x4xf32>, i32 -> vector<32x4xf32>
    %c31_i32 = arith.constant 31 : i32
    %27 = tpu.dynamic_rotate %0 by %c31_i32 dim 0 : vector<32x4xf32>, i32 -> vector<32x4xf32>
    %28 = arith.select %22, %26, %27 : vector<32x4xi1>, vector<32x4xf32>
    %29 = tpu.concatenate %25, %0, %28 in 1 : vector<32x4xf32>, vector<32x4xf32>, vector<32x4xf32> -> vector<32x12xf32>
    %30 = tpu.iota {dimensions = array<i32: 1>} : vector<32x68xi32>
    %31 = tpu.iota {dimensions = array<i32: 0>} : vector<32x68xi32>
    %c16_i32_9 = arith.constant 16 : i32
    %c0_i32_10 = arith.constant 0 : i32
    %32 = arith.cmpi eq, %c16_i32_9, %c0_i32_10 : i32
    %c1_i32_11 = arith.constant 1 : i32
    %33 = arith.select %32, %c1_i32_11, %c16_i32_9 : i32
    %34 = vector.broadcast %33 : i32 to vector<32x68xi32>
    %35 = arith.remsi %31, %34 : vector<32x68xi32>
    %c0_i32_12 = arith.constant 0 : i32
    %36 = vector.broadcast %c0_i32_12 : i32 to vector<32x68xi32>
    %37 = arith.cmpi ne, %35, %36 : vector<32x68xi32>
    %c0_i32_13 = arith.constant 0 : i32
    %38 = vector.broadcast %c0_i32_13 : i32 to vector<32x68xi32>
    %39 = arith.cmpi slt, %35, %38 : vector<32x68xi32>
    %c0_i32_14 = arith.constant 0 : i32
    %40 = arith.cmpi slt, %33, %c0_i32_14 : i32
    %41 = vector.broadcast %40 : i1 to vector<32x68xi1>
    %42 = vector.broadcast %41 : vector<32x68xi1> to vector<32x68xi1>
    %43 = arith.xori %39, %42 : vector<32x68xi1>
    %44 = arith.andi %43, %37 : vector<32x68xi1>
    %45 = vector.broadcast %33 : i32 to vector<32x68xi32>
    %46 = arith.addi %35, %45 : vector<32x68xi32>
    %47 = arith.select %44, %46, %35 : vector<32x68xi1>, vector<32x68xi32>
    %c46_i32 = arith.constant 46 : i32
    %48 = vector.broadcast %c46_i32 : i32 to vector<32x68xi32>
    %49 = arith.addi %47, %48 : vector<32x68xi32>
    %50 = arith.cmpi eq, %30, %49 : vector<32x68xi32>
    %51 = vector.extract_strided_slice %1 {offsets = [0, 0], sizes = [32, 1], strides = [1, 1]} : vector<32x3xf32> to vector<32x1xf32>
    %cst = arith.constant 1.200000e+01 : f32
    %52 = vector.broadcast %cst : f32 to vector<32x1xf32>
    %53 = arith.mulf %51, %52 : vector<32x1xf32>
    %54 = arith.fptosi %53 : vector<32x1xf32> to vector<32x1xi32>
    %c0_i32_15 = arith.constant 0 : i32
    %c12_i32 = arith.constant 12 : i32
    %55 = vector.broadcast %c0_i32_15 : i32 to vector<32x1xi32>
    %56 = arith.maxsi %55, %54 : vector<32x1xi32>
    %57 = vector.broadcast %c12_i32 : i32 to vector<32x1xi32>
    %58 = arith.minsi %57, %56 : vector<32x1xi32>
    %c0_i32_16 = arith.constant 0 : i32
    %59 = vector.broadcast %c0_i32_16 : i32 to vector<32x1xi32>
    %60 = arith.addi %58, %59 : vector<32x1xi32>
    %61 = vector.broadcast %60 : vector<32x1xi32> to vector<32x68xi32>
    %62 = arith.cmpi eq, %30, %61 : vector<32x68xi32>
    %63 = arith.ori %50, %62 : vector<32x68xi1>
    %64 = vector.extract_strided_slice %1 {offsets = [0, 1], sizes = [32, 1], strides = [1, 1]} : vector<32x3xf32> to vector<32x1xf32>
    %cst_17 = arith.constant 7.000000e+00 : f32
    %65 = vector.broadcast %cst_17 : f32 to vector<32x1xf32>
    %66 = arith.mulf %64, %65 : vector<32x1xf32>
    %67 = arith.fptosi %66 : vector<32x1xf32> to vector<32x1xi32>
    %c0_i32_18 = arith.constant 0 : i32
    %c7_i32 = arith.constant 7 : i32
    %68 = vector.broadcast %c0_i32_18 : i32 to vector<32x1xi32>
    %69 = arith.maxsi %68, %67 : vector<32x1xi32>
    %70 = vector.broadcast %c7_i32 : i32 to vector<32x1xi32>
    %71 = arith.minsi %70, %69 : vector<32x1xi32>
    %c13_i32 = arith.constant 13 : i32
    %72 = vector.broadcast %c13_i32 : i32 to vector<32x1xi32>
    %73 = arith.addi %71, %72 : vector<32x1xi32>
    %74 = vector.broadcast %73 : vector<32x1xi32> to vector<32x68xi32>
    %75 = arith.cmpi eq, %30, %74 : vector<32x68xi32>
    %76 = arith.ori %63, %75 : vector<32x68xi1>
    %77 = vector.extract_strided_slice %1 {offsets = [0, 2], sizes = [32, 1], strides = [1, 1]} : vector<32x3xf32> to vector<32x1xf32>
    %cst_19 = arith.constant 2.400000e+01 : f32
    %78 = vector.broadcast %cst_19 : f32 to vector<32x1xf32>
    %79 = arith.mulf %77, %78 : vector<32x1xf32>
    %80 = arith.fptosi %79 : vector<32x1xf32> to vector<32x1xi32>
    %c0_i32_20 = arith.constant 0 : i32
    %c24_i32 = arith.constant 24 : i32
    %81 = vector.broadcast %c0_i32_20 : i32 to vector<32x1xi32>
    %82 = arith.maxsi %81, %80 : vector<32x1xi32>
    %83 = vector.broadcast %c24_i32 : i32 to vector<32x1xi32>
    %84 = arith.minsi %83, %82 : vector<32x1xi32>
    %c21_i32 = arith.constant 21 : i32
    %85 = vector.broadcast %c21_i32 : i32 to vector<32x1xi32>
    %86 = arith.addi %84, %85 : vector<32x1xi32>
    %87 = vector.broadcast %86 : vector<32x1xi32> to vector<32x68xi32>
    %88 = arith.cmpi eq, %30, %87 : vector<32x68xi32>
    %89 = arith.ori %76, %88 : vector<32x68xi1>
    %90 = arith.extui %89 : vector<32x68xi1> to vector<32x68xi32>
    %91 = arith.sitofp %90 : vector<32x68xi32> to vector<32x68xf32>
    %92 = tpu.concatenate %29, %91 in 1 : vector<32x12xf32>, vector<32x68xf32> -> vector<32x80xf32>
    %c0_21 = arith.constant 0 : index
    %c0_22 = arith.constant 0 : index
    %93 = vector.load %arg3[%c0_21, %c0_22] : memref<80x32xf32, #tpu.memory_space<vmem>>, vector<80x32xf32>
    %cst_23 = arith.constant dense<0.000000e+00> : vector<32x32xf32>
    %94 = tpu.matmul %92, %93, %cst_23 {dimension_numbers = #tpu.dot_dimension_numbers<[1], [0], [0], [1], [0, 0, 1, 1], [], []>, precision = #tpu.contract_precision<fp32>} : vector<32x80xf32>, vector<80x32xf32>, vector<32x32xf32> -> vector<32x32xf32>
    %c0_24 = arith.constant 0 : index
    %c0_25 = arith.constant 0 : index
    %95 = vector.load %arg4[%c0_24, %c0_25] : memref<32x32xf32, #tpu.memory_space<vmem>>, vector<32x32xf32>
    tpu.vector_store %arg4[%c0_24, %c0_25], %94 {strides = array<i32>} : memref<32x32xf32, #tpu.memory_space<vmem>>, vector<32x32xf32>,
    return
  }
  func.func @transform_0(%arg0: i32) -> (i32, i32) {
    %c0_i32 = arith.constant 0 : i32
    %c0_i32_0 = arith.constant 0 : i32
    return %arg0, %c0_i32 : i32, i32
  }
  func.func @transform_1(%arg0: i32) -> (i32, i32) {
    %c0_i32 = arith.constant 0 : i32
    %c0_i32_0 = arith.constant 0 : i32
    return %arg0, %c0_i32 : i32, i32
  }
  func.func @transform_2(%arg0: i32) -> (i32, i32) {
    %c0_i32 = arith.constant 0 : i32
    %c0_i32_0 = arith.constant 0 : i32
    %c0_i32_1 = arith.constant 0 : i32
    return %c0_i32, %c0_i32_0 : i32, i32
  }
  func.func @transform_3(%arg0: i32) -> (i32, i32) {
    %c0_i32 = arith.constant 0 : i32
    %c0_i32_0 = arith.constant 0 : i32
    return %arg0, %c0_i32 : i32, i32
  }
}

</mosaic_0001>

<bundles_post_ra>
// kernel: tpu_custom_call.1
= control target key start
LH: loop header
LB: loop body
LE: loop exit
PB: predicated region body
PF: predicated region fallthrough
CT: control target
= control target key end

     0   :  { %v1527_v3 = vmov 0   ;;  %v1528_v5 = vmov 1   ;;  %s2029_s0 = inlined_call_operand.vmem [shape: f32[32,4], index: 0, kind: input, shape index: {}]   ;;  %s2030_s1 = inlined_call_operand.vmem [shape: f32[32,3], index: 1, kind: input, shape index: {}]   ;;  %s2031_s2 = inlined_call_operand.vmem [shape: f32[80,32], index: 2, kind: input, shape index: {}]   ;;  %s2032_s3 = inlined_call_operand.hbm [shape: f32[32,32], index: 3, kind: output, shape index: {}]  }
   0x1   :  { %v19_v0 = vld [vmem:[%s2030_s1] sm:$0xff]  ;;  %v20_v1 = vld [vmem:[%s2030_s1 + $0x8] sm:$0xff]  ;;  %v1565_v2 = vld [vmem:[%s2030_s1 + $0x10] sm:$0xff]  ;;  %1484 = vset.pattern.permute.xlu0 %v1527_v3  ;;  %1485 = vset.pattern.permute.xlu1 %v1528_v5 }
   0x2   :  { %v162_v4 = vmul.f32 12.0, %v19_v0  ;;  %v206_v6 = vmul.f32 7.0, %v19_v0  ;;  %v163_v7 = vmul.f32 12.0, %v20_v1  ;;  %v207_v8 = vmul.f32 7.0, %v20_v1  ;;  %v22_v9 = vld [vmem:[%s2030_s1 + $0x18] sm:$0xff] }
   0x3   :  { %v254_v10 = vmul.f32 24.0, %v19_v0  ;;  %v255_v11 = vmul.f32 24.0, %v20_v1  ;;  %v164_v12 = vmul.f32 12.0, %v1565_v2  ;;  %v165_v13 = vmul.f32 12.0, %v22_v9 }
   0x4   :  { %8 = vsyncpa [#allocation3], 0  ;;  %v1451_v14 = vtrunc.f32 %v162_v4  ;;  %v1459_v15 = vtrunc.f32 %v206_v6  ;;  %v1453_v16 = vtrunc.f32 %v163_v7  ;;  %v1461_v17 = vtrunc.f32 %v207_v8  ;;  %s1531_s27 = smov 8   ;;  %s1534_s20 = smov [#allocation2]  }
   0x5   :  { %v1467_v18 = vtrunc.f32 %v254_v10  ;;  %v1469_v19 = vtrunc.f32 %v255_v11  ;;  %v1457_v20 = vtrunc.f32 %v165_v13  ;;  %v1455_v27 = vtrunc.f32 %v164_v12  ;;  %s1056_s21 = sshll.u32 %s1534_s20, 4  ;;  %s1057_s21 = int_to_ptr.vmem [resolvable:$true] %s1056_s21 }
   0x6   :  { %v1452_v21 = vcvt.f32.s32 %v1451_v14  ;;  %v1460_v22 = vcvt.f32.s32 %v1459_v15  ;;  %v1454_v23 = vcvt.f32.s32 %v1453_v16  ;;  %v1462_v24 = vcvt.f32.s32 %v1461_v17  ;;  %v1593_v14 = vld [vmem:[%s2029_s0 + $0x10] sm:$0xff]  ;;  %v1598_v15 = vld [vmem:[%s2029_s0 + $0x18] sm:$0xff]  ;;  %v16_v17 = vld [vmem:[%s2029_s0 + $0x8] sm:$0xff]  ;;  %s1503_s22 = scalar_lea.vmem %s1057_s21, 512  ;;  %p1508_p1 = scmp.lt.s32.totalorder %s1057_s21, %s1057_s21 }
   0x7   :  { %v1468_v25 = vcvt.f32.s32 %v1467_v18  ;;  %v1470_v26 = vcvt.f32.s32 %v1469_v19  ;;  %v1458_v28 = vcvt.f32.s32 %v1457_v20  ;;  %v1456_v36 = vcvt.f32.s32 %v1455_v27  ;;  %p1504_p0 = scmp.ne.s32.totalorder %s1057_s21, %s1503_s22  ;;  %p1509_p2 = scmp.lt.s32.totalorder %s1503_s22, %s1503_s22 }
   0x8   :  { %vm170_vm0 = vcmp.gt.s32.totalorder %v1452_v21, 0  ;;  %vm214_vm1 = vcmp.gt.s32.totalorder %v1460_v22, 0  ;;  %vm172_vm2 = vcmp.gt.s32.totalorder %v1454_v23, 0  ;;  %vm216_vm3 = vcmp.gt.s32.totalorder %v1462_v24, 0 }
   0x9   :  { %v171_v29 = vsel %vm170_vm0, %v1452_v21, 0  ;;  %v215_v30 = vsel %vm214_vm1, %v1460_v22, 0  ;;  %v173_v31 = vsel %vm172_vm2, %v1454_v23, 0  ;;  %v217_v32 = vsel %vm216_vm3, %v1462_v24, 0  ;;  %p1510_p3 = por %p1509_p2, %p1508_p1 }
   0xa   :  { %vm178_vm4 = vcmp.lt.s32.totalorder %v171_v29, 12  ;;  %vm222_vm5 = vcmp.lt.s32.totalorder %v215_v30, 7  ;;  %vm180_vm6 = vcmp.lt.s32.totalorder %v173_v31, 12  ;;  %vm224_vm7 = vcmp.lt.s32.totalorder %v217_v32, 7 }
   0xb   :  { %v179_v33 = vsel %vm178_vm4, %v171_v29, 12  ;;  %v223_v34 = vsel %vm222_vm5, %v215_v30, 7  ;;  %v225_v35 = vsel %vm224_vm7, %v217_v32, 7  ;;  %vm262_vm8 = vcmp.gt.s32.totalorder %v1468_v25, 0  ;;  %p1511_p4 = pnand %p1510_p3, %p1504_p0 }
   0xc   :  { %187 = vperm.xlu0 %1484, %v179_v33   ;;  %v230_v37 = vadd.s32 13, %v223_v34  ;;  %vm264_vm9 = vcmp.gt.s32.totalorder %v1470_v26, 0  ;;  %v181_v38 = vsel %vm180_vm6, %v173_v31, 12  ;;  %v263_v39 = vsel %vm262_vm8, %v1468_v25, 0 }
   0xd   :  { %v265_v40 = vsel %vm264_vm9, %v1470_v26, 0  ;;  %vm176_vm10 = vcmp.gt.s32.totalorder %v1458_v28, 0  ;;  %v231_v41 = vadd.s32 13, %v225_v35  ;;  %vm270_vm11 = vcmp.lt.s32.totalorder %v263_v39, 24 }
   0xe   :  { %235 = vperm.xlu1 %1485, %v230_v37   ;;  %vm272_vm12 = vcmp.lt.s32.totalorder %v265_v40, 24  ;;  %v23_v42 = vlaneseq  ;;  %v271_v43 = vsel %vm270_vm11, %v263_v39, 24  ;;  %vm174_vm13 = vcmp.gt.s32.totalorder %v1456_v36, 0  ;;  %v1659_v39 = vld [vmem:[%s2031_s2 + $0x8] sm:$0xff] }
   0xf   :  { %v273_v44 = vsel %vm272_vm12, %v265_v40, 24  ;;  %v177_v45 = vsel %vm176_vm10, %v1458_v28, 0  ;;  %v278_v46 = vadd.s32 21, %v271_v43  ;;  %v208_v47 = vmul.f32 7.0, %v1565_v2 }
  0x10   :  { %190 = vperm.xlu0 %1484, %v181_v38   ;;  %v256_v48 = vmul.f32 24.0, %v1565_v2  ;;  %v209_v49 = vmul.f32 7.0, %v22_v9  ;;  %v257_v50 = vmul.f32 24.0, %v22_v9  ;;  %v279_v51 = vadd.s32 21, %v273_v44  ;;  %v1654_v38 = vld [vmem:[%s2031_s2] sm:$0xff] }
  0x11   :  { %v175_v52 = vsel %vm174_vm13, %v1456_v36, 0  ;;  %vm184_vm14 = vcmp.lt.s32.totalorder %v177_v45, 12  ;;  %v1575_v53 = vshrl.u32 %v23_v42, 7  ;;  %v1463_v54 = vtrunc.f32 %v208_v47  ;;  %v1680_v47 = vld [vmem:[%s2031_s2 + $0x18] sm:$0xff] }
  0x12   :  { %238 = vperm.xlu1 %1485, %v231_v41   ;;  %v1471_v55 = vtrunc.f32 %v256_v48  ;;  %v1465_v56 = vtrunc.f32 %v209_v49  ;;  %v1473_v57 = vtrunc.f32 %v257_v50  ;;  %v1529_v58 = vmov 2  }
  0x13   :  { %v32_v59 = vand.u32 15, %v1575_v53  ;;  %v25_v60 = vadd.s32 8, %v1575_v53  ;;  %v1464_v61 = vcvt.f32.s32 %v1463_v54  ;;  %vm182_vm15 = vcmp.lt.s32.totalorder %v175_v52, 12 }
  0x14   :  { %1486 = vset.pattern.permute.xlu0 %v1529_v58  ;;  %v1472_v62 = vcvt.f32.s32 %v1471_v55  ;;  %v1466_v63 = vcvt.f32.s32 %v1465_v56  ;;  %v185_v0 = vsel %vm184_vm14, %v177_v45, 12  ;;  %v1474_v1 = vcvt.f32.s32 %v1473_v57  ;;  %v1714_v56 = vld [vmem:[%s2031_s2 + $0x20] sm:$0xff]  ;;  %v1719_v57 = vld [vmem:[%s2031_s2 + $0x28] sm:$0xff] }
  0x15   :  { %283 = vperm.xlu0 %1486, %v278_v46   ;;  %v1582_v2 = vand.u32 127, %v23_v42  ;;  %vm218_vm0 = vcmp.gt.s32.totalorder %v1464_v61, 0  ;;  %v1586_v4 = vadd.s32 46, %v32_v59  ;;  %v39_v9 = vand.u32 15, %v25_v60  ;;  %v1675_v46 = vld [vmem:[%s2031_s2 + $0x10] sm:$0xff] }
  0x16   :  { %1487 = vset.pattern.permute.xlu1 %v1529_v58  ;;  %vm266_vm1 = vcmp.gt.s32.totalorder %v1472_v62, 0  ;;  %vm220_vm2 = vcmp.gt.s32.totalorder %v1466_v63, 0  ;;  %v219_v6 = vsel %vm218_vm0, %v1464_v61, 0  ;;  %v183_v10 = vsel %vm182_vm15, %v175_v52, 12 }
  0x17   :  { %286 = vperm.xlu1 %1487, %v279_v51   ;;  %v267_v7 = vsel %vm266_vm1, %v1472_v62, 0  ;;  %v221_v8 = vsel %vm220_vm2, %v1466_v63, 0  ;;  %vm226_vm3 = vcmp.lt.s32.totalorder %v219_v6, 7  ;;  %vm268_vm6 = vcmp.gt.s32.totalorder %v1474_v1, 0 }
  0x18   :  { %vm274_vm4 = vcmp.lt.s32.totalorder %v267_v7, 24  ;;  %v227_v11 = vsel %vm226_vm3, %v219_v6, 7  ;;  %vm228_vm5 = vcmp.lt.s32.totalorder %v221_v8, 7  ;;  %vm158_vm7 = vcmp.eq.s32.totalorder %v1582_v2, %v1586_v4 }
  0x19   :  { %1489 = vset.pattern.permute.xlu0 %v1527_v3  ;;  %v275_v12 = vsel %vm274_vm4, %v267_v7, 24  ;;  %v1602_v16 = vadd.s32 46, %v39_v9  ;;  %v232_v18 = vadd.s32 13, %v227_v11  ;;  %v229_v19 = vsel %vm228_vm5, %v221_v8, 7 }
  0x1a   :  { %196 = vperm.xlu0 %1489, %v185_v0   ;;  %v280_v13 = vadd.s32 21, %v275_v12  ;;  %v269_v20 = vsel %vm268_vm6, %v1474_v1, 0  ;;  %v27_v21 = vadd.s32 24, %v1575_v53  ;;  %v99_v22 = vrot.slane %v1593_v14, 1  ;;  %v1754_v0 = vld [vmem:[%s2031_s2 + $0x30] sm:$0xff]  ;;  %v1759_v1 = vld [vmem:[%s2031_s2 + $0x38] sm:$0xff] }
  0x1b   :  { %1488 = vset.pattern.permute.xlu1 %v1527_v3  ;;  %v15_v3 = vld [vmem:[%s2029_s0] sm:$0xff]  ;;  %vm159_vm8 = vcmp.eq.s32.totalorder %v1582_v2, %v1602_v16  ;;  %v100_v23 = vrot.slane %v1598_v15, 1  ;;  %v98_v25 = vrot.slane %v16_v17, 1  ;;  %v233_v27 = vadd.s32 13, %v229_v19  ;;  %s1530_s0 = smov 4  }
  0x1c   :  { %193 = vperm.xlu1 %1488, %v183_v10   ;;  %v97_v24 = vrot.slane %v15_v3, 1  ;;  %v53_v26 = vand.u32 15, %v27_v21  ;;  %vm276_vm9 = vcmp.lt.s32.totalorder %v269_v20, 24  ;;  %vm101_vm10 = vcmp.lt.s32.totalorder %v1575_v53, 7  ;;  %v1782_v12 = vld [vmem:[%s2031_s2 + $0x40] sm:$0xff] }
  0x1d   :  { %vm81_vm11 = vcmp.eq.s32.totalorder %v39_v9, 15  ;;  %v1622_v29 = vsel %vm101_vm10, %v98_v25, %v99_v22  ;;  %v277_v31 = vsel %vm276_vm9, %v269_v20, 24  ;;  %v102_v33 = vsel %vm101_vm10, %v99_v22, %v100_v23 }
  0x1e   :  { %1491 = vset.pattern.permute.xlu0 %v1529_v58  ;;  %v1618_v28 = vadd.s32 46, %v53_v26  ;;  %v1626_v30 = vsel %vm101_vm10, %v100_v23, %v97_v24  ;;  %v281_v32 = vadd.s32 21, %v277_v31  ;;  %vm1639_vm13 = vcmp.eq.s32.totalorder %v53_v26, 15 }
  0x1f   :  { %289 = vperm.xlu0 %1491, %v280_v13   ;;  %v84_v35 = vrot.slane %v15_v3, 7  ;;  %v109_v36 = vsel %vm1639_vm13, %v1622_v29, %v1626_v30  ;;  %v104_v37 = vsel %vm101_vm10, %v97_v24, %v98_v25  ;;  %vm1663_vm14 = vcmp.eq.s32.totalorder %v32_v59, 0  ;;  %v1787_v13 = vld [vmem:[%s2031_s2 + $0x48] sm:$0xff]  ;;  %s1533_s2 = smov 12  }
  0x20   :  { %1490 = vset.pattern.permute.xlu1 %v1528_v5  ;;  %vm161_vm12 = vcmp.eq.s32.totalorder %v1582_v2, %v1618_v28  ;;  %v107_v5 = vsel %vm81_vm11, %v1626_v30, %v1622_v29  ;;  %v85_v41 = vrot.slane %v16_v17, 7  ;;  %v86_v42 = vrot.slane %v1593_v14, 7 }
  0x21   :  { %241 = vperm.xlu1 %1490, %v232_v18   ;;  %v87_v43 = vrot.slane %v1598_v15, 7  ;;  %v355_v44 = vand.u32 4294901760, %v1654_v38  ;;  %v358_v45 = vand.u32 4294901760, %v1659_v39  ;;  %vm88_vm15 = vcmp.lt.s32.totalorder %v1575_v53, 1 }
  0x22   :  { %v1686_v48 = vsel %vm88_vm15, %v85_v41, %v86_v42  ;;  %v361_v50 = vand.u32 4294901760, %v1675_v46  ;;  %v364_v51 = vand.u32 4294901760, %v1680_v47  ;;  %v1709_v55 = vsel %vm88_vm15, %v84_v35, %v85_v41 }
  0x23   :  { %116 = vrot.lane.b32.xlu0 %v16_v17, %s1530_s0  ;;  %v1692_v49 = vsel %vm88_vm15, %v87_v43, %v84_v35  ;;  %v1701_v52 = vpack.c.bf16 %v358_v45, %v355_v44  ;;  %v367_v59 = vand.u32 4294901760, %v1714_v56  ;;  %v370_v60 = vand.u32 4294901760, %v1719_v57 }
  0x24   :  { %v93_v54 = vsel %vm1663_vm14, %v1686_v48, %v1692_v49  ;;  %v373_v6 = vand.u32 4294901760, %v1754_v0  ;;  %v376_v7 = vand.u32 4294901760, %v1759_v1  ;;  %v26_v9 = vadd.s32 16, %v1575_v53 }
  0x25   :  { %244 = vperm.xlu1 %1490, %v233_v27   ;;  %1372 = vmatprep.subr.bf16.mxu0 %v1701_v52  ;;  %v1739_v61 = vpack.c.bf16 %v370_v60, %v367_v59  ;;  %v379_v16 = vand.u32 4294901760, %v1782_v12  ;;  %v1818_v24 = vsub.f32 %v1654_v38, %v355_v44  ;;  %v1823_v25 = vsub.f32 %v1659_v39, %v358_v45 }
  0x26   :  { %1312 = vmatprep.subr.bf16.mxu1 %v1701_v52  ;;  %1374 = vmatpush3.bf16.msra.mxu0 %v1701_v52  ;;  %v1774_v10 = vpack.c.bf16 %v376_v7, %v373_v6  ;;  %v46_v18 = vand.u32 15, %v26_v9  ;;  %v1532_v31 = vmov 0.0   ;;  %v1841_v38 = vsel %vm88_vm15, %v86_v42, %v87_v43 }
  0x27   :  { %132 = vrot.lane.b32.xlu0 %v107_v5, %s1531_s27  ;;  %1314 = vmatpush3.bf16.msra.mxu1 %v1701_v52  ;;  %v472_v26 = vand.u32 4294901760, %v1818_v24  ;;  %v479_v27 = vand.u32 4294901760, %v1823_v25  ;;  %v520_v4 = vsub.f32 %v1759_v1, %v376_v7  ;;  %v527_v1 = vsub.f32 %v1782_v12, %v379_v16 }
  0x28   :  { %vm1803_vm9 = vcmp.eq.s32.totalorder %v46_v18, 0  ;;  %v156_v53 = vadd.s32 46, %v46_v18  ;;  %v1929_v40 = vsub.f32 %v1714_v56, %v367_v59  ;;  %vm1046_vm14 = vcmask 261120  }
  0x29   :  { %1492 = vset.pattern.permute.xlu1 %v1529_v58  ;;  %v1725_v58 = vpack.c.bf16 %v364_v51, %v361_v50  ;;  %v95_v23 = vsel %vm1803_vm9, %v1692_v49, %v1686_v48  ;;  %v473_v44 = vsub.f32 %v1818_v24, %v472_v26  ;;  %v480_v45 = vsub.f32 %v1823_v25, %v479_v27 }
  0x2a   :  { %292 = vperm.xlu1 %1492, %v281_v32   ;;  %v521_v9 = vand.u32 4294901760, %v520_v4 }
  0x2b   :  { %118 = vrot.lane.b32.xlu0 %v1593_v14, %s1530_s0  ;;  %1376 = vmatprep.subr.bf16.mxu0 %v1725_v58  ;;  %v474_v14 = vand.u32 4294901760, %v473_v44  ;;  %v481_v42 = vand.u32 4294901760, %v480_v45 }
  0x2c   :  { %1316 = vmatprep.subr.bf16.mxu1 %v1725_v58  ;;  %1378 = vmatpush3.bf16.msra.mxu0 %v1725_v58  ;;  %v522_v30 = vsub.f32 %v520_v4, %v521_v9 }
  0x2d   :  { %1318 = vmatpush3.bf16.msra.mxu1 %v1725_v58  ;;  %1380 = vmatprep.subr.bf16.mxu0 %v1739_v61  ;;  %v1854_v43 = vpack.c.bf16 %v481_v42, %v474_v14 }
  0x2e   :  { %114 = vrot.lane.b32.xlu1 %v15_v3, %s1530_s0  ;;  %1320 = vmatprep.subr.bf16.mxu1 %v1739_v61  ;;  %v382_v3 = vand.u32 4294901760, %v1787_v13  ;;  %v523_v18 = vand.u32 4294901760, %v522_v30 }
  0x2f   :  { %134 = vrot.lane.b32.xlu0 %v102_v33, %s1531_s27 }
  0x30   :  { %1382 = vmatpush3.bf16.msra.mxu0 %v1739_v61  ;;  %v1800_v20 = vpack.c.bf16 %v382_v3, %v379_v16  ;;  %v534_v34 = vsub.f32 %v1787_v13, %v382_v3 }
  0x31   :  { %1322 = vmatpush3.bf16.msra.mxu1 %v1739_v61  ;;  %1384 = vmatprep.subr.bf16.mxu0 %v1774_v10 }
  0x32   :  { %130 = vrot.lane.b32.xlu1 %v104_v37, %s1531_s27  ;;  %1324 = vmatprep.subr.bf16.mxu1 %v1774_v10  ;;  %v1833_v37 = vpack.c.bf16 %v479_v27, %v472_v26  ;;  %v535_v7 = vand.u32 4294901760, %v534_v34 }
  0x34   :  { %1386 = vmatpush3.bf16.msra.mxu0 %v1774_v10  ;;  %v536_v26 = vsub.f32 %v534_v34, %v535_v7 }
  0x35   :  { %1326 = vmatpush3.bf16.msra.mxu1 %v1774_v10  ;;  %1388 = vmatprep.subr.bf16.mxu0 %v1800_v20 }
  0x36   :  { %1328 = vmatprep.subr.bf16.mxu1 %v1800_v20  ;;  %v537_v27 = vand.u32 4294901760, %v536_v26 }
  0x38   :  { %1390 = vmatpush3.bf16.msra.mxu0 %v1800_v20 }
  0x39   :  { %1330 = vmatpush3.bf16.msra.mxu1 %v1800_v20  ;;  %1392 = vmatprep.subr.bf16.mxu0 %v1833_v37 }
  0x3a   :  { %1332 = vmatprep.subr.bf16.mxu1 %v1854_v43 }
  0x8b   :  { %v188_v62 = vpop.permute.xlu0 %187 }
  0x8c   :  { %vm198_vm0 = vcmp.eq.s32.totalorder %v1582_v2, %v188_v62 }
  0x8d   :  { %vm202_vm1 = vmor %vm158_vm7, %vm198_vm0  ;;  %v236_v63 = vpop.permute.xlu1 %235 }
  0x8e   :  { %vm246_vm2 = vcmp.eq.s32.totalorder %v1582_v2, %v236_v63  ;;  %v513_v63 = vsub.f32 %v1754_v0, %v373_v6 }
  0x8f   :  { %vm1764_vm3 = vmor %vm202_vm1, %vm246_vm2  ;;  %v191_v8 = vpop.permute.xlu0 %190 }
  0x90   :  { %vm199_vm4 = vcmp.eq.s32.totalorder %v1582_v2, %v191_v8 }
  0x91   :  { %vm203_vm5 = vmor %vm159_vm8, %vm199_vm4  ;;  %v239_v11 = vpop.permute.xlu1 %238 }
  0x92   :  { %vm247_vm6 = vcmp.eq.s32.totalorder %v1582_v2, %v239_v11 }
  0x93   :  { %vm1794_vm7 = vmor %vm203_vm5, %vm247_vm6 }
  0x94   :  { %v284_v19 = vpop.permute.xlu0 %283 }
  0x95   :  { %vm294_vm8 = vcmp.eq.s32.totalorder %v1582_v2, %v284_v19 }
  0x96   :  { %vm298_vm10 = vmor %vm1764_vm3, %vm294_vm8  ;;  %v287_v22 = vpop.permute.xlu1 %286 }
  0x97   :  { %vm295_vm11 = vcmp.eq.s32.totalorder %v1582_v2, %v287_v22  ;;  %v1067_v5 = vsel %vm298_vm10, 1.0, %v1532_v31 }
  0x98   :  { %vm299_vm0 = vmor %vm1794_vm7, %vm295_vm11 }
  0x99   :  { %v1068_v32 = vsel %vm299_vm0, 1.0, %v1532_v31  ;;  %v197_v33 = vpop.permute.xlu0 %196  ;;  %vm142_vm0 = vcmask 31744  }
  0x9a   :  { %v1493_v35 = vpack.i.bf16 %v1068_v32, %v1067_v5  ;;  %vm201_vm1 = vcmp.eq.s32.totalorder %v1582_v2, %v197_v33  ;;  %v1900_v33 = vpack.c.bf16 %v520_v4, %v513_v63 }
  0x9b   :  { %v194_v39 = vpop.permute.xlu1 %193  ;;  %vm1846_vm2 = vmor %vm161_vm12, %vm201_vm1  ;;  %vm160_vm12 = vcmp.eq.s32.totalorder %v1582_v2, %v156_v53  ;;  %v1909_v53 = vsub.f32 %v1675_v46, %v361_v50  ;;  %vm147_vm1 = vcmask 64512  }
  0x9c   :  { %1494 = vrot.lane.b32.xlu1 %v1493_v35, %s1533_s2  ;;  %vm200_vm15 = vcmp.eq.s32.totalorder %v1582_v2, %v194_v39  ;;  %v1902_v35 = vpack.c.bf16 %v534_v34, %v527_v1 }
  0x9d   :  { %vm204_vm4 = vmor %vm160_vm12, %vm200_vm15  ;;  %vm341_vm12 = vcmask 654336   ;;  %v486_v50 = vand.u32 4294901760, %v1909_v53 }
  0x9e   :  { %v290_v28 = vpop.permute.xlu0 %289 }
  0x9f   :  { %vm296_vm7 = vcmp.eq.s32.totalorder %v1582_v2, %v290_v28  ;;  %v487_v56 = vsub.f32 %v1909_v53, %v486_v50 }
  0xa0   :  { %v242_v62 = vpop.permute.xlu1 %241  ;;  %120 = vrot.lane.b32.xlu1 %v1598_v15, %s1530_s0  ;;  %v514_v15 = vand.u32 4294901760, %v513_v63 }
  0xa1   :  { %vm248_vm3 = vcmp.eq.s32.totalorder %v1582_v2, %v242_v62 }
  0xa2   :  { %vm252_vm5 = vmor %vm204_vm4, %vm248_vm3  ;;  %v1884_v6 = vpack.c.bf16 %v521_v9, %v514_v15  ;;  %v515_v29 = vsub.f32 %v513_v63, %v514_v15  ;;  %v117_v41 = vpop.permute.xlu0 %116  ;;  %v500_v9 = vand.u32 4294901760, %v1929_v40 }
  0xa3   :  { %vm300_vm13 = vmor %vm252_vm5, %vm296_vm7 }
  0xa4   :  { %v245_v8 = vpop.permute.xlu1 %244  ;;  %136 = vrot.lane.b32.xlu1 %v109_v36, %s1531_s27  ;;  %v528_v36 = vand.u32 4294901760, %v527_v1  ;;  %v516_v17 = vand.u32 4294901760, %v515_v29  ;;  %v1069_v13 = vsel %vm300_vm13, 1.0, %v1532_v31 }
  0xa5   :  { %vm249_vm6 = vcmp.eq.s32.totalorder %v1582_v2, %v245_v8 }
  0xa6   :  { %vm1878_vm8 = vmor %vm1846_vm2, %vm249_vm6  ;;  %v1887_v19 = vpack.c.bf16 %v535_v7, %v528_v36  ;;  %v529_v22 = vsub.f32 %v527_v1, %v528_v36  ;;  %v1891_v12 = vpack.c.bf16 %v523_v18, %v516_v17  ;;  %v133_v45 = vpop.permute.xlu0 %132  ;;  %vm326_vm2 = vcmask 97280  }
  0xa7   :  { %v488_v36 = vand.u32 4294901760, %v487_v56 }
  0xa8   :  { %v530_v3 = vand.u32 4294901760, %v529_v22 }
  0xa9   :  { %v293_v11 = vpop.permute.xlu1 %292 }
  0xaa   :  { %vm297_vm10 = vcmp.eq.s32.totalorder %v1582_v2, %v293_v11  ;;  %v1893_v32 = vpack.c.bf16 %v537_v27, %v530_v3  ;;  %v1898_v2 = vpack.c.bf16 %v1823_v25, %v1818_v24  ;;  %v1914_v24 = vsub.f32 %v1680_v47, %v364_v51  ;;  %v119_v1 = vpop.permute.xlu0 %118 }
  0xab   :  { %vm301_vm11 = vmor %vm1878_vm8, %vm297_vm10  ;;  %v501_v11 = vsub.f32 %v1929_v40, %v500_v9 }
  0xac   :  { %v1070_v16 = vsel %vm301_vm11, 1.0, %v1532_v31  ;;  %v144_v31 = vsel %vm142_vm0, %v1709_v55, %v117_v41  ;;  %v493_v51 = vand.u32 4294901760, %v1914_v24 }
  0xad   :  { %v1498_v5 = vpack.i.bf16 %v1070_v16, %v1069_v13  ;;  %v115_v39 = vpop.permute.xlu1 %114  ;;  %v149_v14 = vsel %vm147_vm1, %v144_v31, %v133_v45 }
  0xae   :  { %v143_v25 = vsel %vm142_vm0, %v93_v54, %v115_v39  ;;  %v1934_v54 = vsub.f32 %v1719_v57, %v370_v60  ;;  %v494_v59 = vsub.f32 %v1914_v24, %v493_v51  ;;  %v1395_v30 = vpack.c.bf16 %v493_v51, %v486_v50  ;;  %v135_v41 = vpop.permute.xlu0 %134 }
  0xaf   :  { %1499 = vrot.lane.b32.xlu0 %v1498_v5, %s1533_s2  ;;  %v502_v5 = vand.u32 4294901760, %v501_v11 }
  0xb0   :  { %v507_v57 = vand.u32 4294901760, %v1934_v54  ;;  %v495_v7 = vand.u32 4294901760, %v494_v59 }
  0xb1   :  { %v131_v44 = vpop.permute.xlu1 %130 }
  0xb2   :  { %v148_v47 = vsel %vm147_vm1, %v143_v25, %v131_v44  ;;  %v508_v17 = vsub.f32 %v1934_v54, %v507_v57  ;;  %v1335_v3 = vpack.c.bf16 %v495_v7, %v488_v36  ;;  %v1399_v27 = vpack.c.bf16 %v507_v57, %v500_v9 }
  0xb3   :  { %v145_v44 = vsel %vm142_vm0, %v95_v23, %v119_v1 }
  0xb4   :  { %v509_v39 = vand.u32 4294901760, %v508_v17 }
  0xb6   :  { %v1339_v45 = vpack.c.bf16 %v509_v39, %v502_v5 }
 0x10e   :  { %v1495_v55 = vpop.permute.xlu1 %1494 }
 0x10f   :  { %v1497_v42 = vunpack.i.h.bf16 %v1495_v55  ;;  %v1496_v46 = vunpack.i.l.bf16 %v1495_v55 }
 0x111   :  { %v327_v62 = vsel %vm326_vm2, %v148_v47, %v1496_v46  ;;  %v328_v28 = vsel %vm326_vm2, %v149_v14, %v1497_v42 }
 0x112   :  { %v346_v63 = vsel %vm341_vm12, %v328_v28, 0  ;;  %v343_v4 = vsel %vm341_vm12, %v327_v62, 0  ;;  %v121_v26 = vpop.permute.xlu1 %120 }
 0x113   :  { %v1940_v8 = vand.u32 4294901760, %v346_v63  ;;  %v1942_v15 = vand.u32 4294901760, %v343_v4 }
 0x115   :  { %v1949_v60 = vsub.f32 %v346_v63, %v1940_v8  ;;  %v1952_v0 = vsub.f32 %v343_v4, %v1942_v15 }
 0x116   :  { %v137_v31 = vpop.permute.xlu1 %136 }
 0x117   :  { %v431_v34 = vand.u32 4294901760, %v1952_v0  ;;  %v441_v29 = vand.u32 4294901760, %v1949_v60 }
 0x119   :  { %1253 = vmatprep.mubr.f32.mxu0 %v431_v34  ;;  %v432_v18 = vsub.f32 %v1952_v0, %v431_v34  ;;  %v442_v22 = vsub.f32 %v1949_v60, %v441_v29 }
 0x11a   :  { %1254 = vmatmul.mubr.f32.vlgmr.msra.gmra.mrb[0].mxu0 %v441_v29 }
 0x11b   :  { %v433_v13 = vand.u32 4294901760, %v432_v18  ;;  %1394 = vmatpush3.bf16.msra.mxu0 %v1833_v37  ;;  %v443_v16 = vand.u32 4294901760, %v442_v22  ;;  %v146_v37 = vsel %vm142_vm0, %v1841_v38, %v121_v26 }
 0x11c   :  { %1396 = vmatprep.subr.bf16.mxu0 %v1395_v30  ;;  %v151_v42 = vsel %vm147_vm1, %v146_v37, %v137_v31 }
 0x11d   :  { %1175 = vmatprep.mubr.f32.mxu1 %v433_v13 }
 0x11e   :  { %1176 = vmatmul.mubr.f32.vlgmr.msra.gmra.mrb[0].mxu1 %v443_v16 }
 0x11f   :  { %1334 = vmatpush3.bf16.msra.mxu1 %v1854_v43  ;;  %1398 = vmatpush3.bf16.msra.mxu0 %v1395_v30  ;;  %v150_v43 = vsel %vm147_vm1, %v145_v44, %v135_v41 }
 0x120   :  { %1336 = vmatprep.subr.bf16.mxu1 %v1335_v3  ;;  %1400 = vmatprep.subr.bf16.mxu0 %v1399_v27 }
 0x121   :  { %v1500_v25 = vpop.permute.xlu0 %1499 }
 0x122   :  { %v1502_v55 = vunpack.i.h.bf16 %v1500_v25  ;;  %v1501_v14 = vunpack.i.l.bf16 %v1500_v25 }
 0x123   :  { %1338 = vmatpush3.bf16.msra.mxu1 %v1335_v3  ;;  %1402 = vmatpush3.bf16.msra.mxu0 %v1399_v27 }
 0x124   :  { %v329_v48 = vsel %vm326_vm2, %v150_v43, %v1501_v14  ;;  %v330_v49 = vsel %vm326_vm2, %v151_v42, %v1502_v55  ;;  %1340 = vmatprep.subr.bf16.mxu1 %v1339_v45  ;;  %1404 = vmatprep.subr.bf16.mxu0 %v1884_v6 }
 0x125   :  { %v349_v21 = vsel %vm341_vm12, %v329_v48, 0  ;;  %v352_v23 = vsel %vm341_vm12, %v330_v49, 0 }
 0x126   :  { %v449_v38 = vand.u32 4294901760, %v349_v21  ;;  %v459_v46 = vand.u32 4294901760, %v352_v23 }
 0x127   :  { %1342 = vmatpush3.bf16.msra.mxu1 %v1339_v45  ;;  %1406 = vmatpush3.bf16.msra.mxu0 %v1884_v6 }
 0x128   :  { %v450_v50 = vsub.f32 %v349_v21, %v449_v38  ;;  %v460_v47 = vsub.f32 %v352_v23, %v459_v46  ;;  %1344 = vmatprep.subr.bf16.mxu1 %v1891_v12  ;;  %1408 = vmatprep.subr.bf16.mxu0 %v1887_v19 }
 0x12a   :  { %v451_v51 = vand.u32 4294901760, %v450_v50  ;;  %v461_v62 = vand.u32 4294901760, %v460_v47 }
 0x12b   :  { %1346 = vmatpush3.bf16.msra.mxu1 %v1891_v12  ;;  %1410 = vmatpush3.bf16.msra.mxu0 %v1887_v19  ;;  %v1355_v19 = vpack.c.bf16 %v1914_v24, %v1909_v53 }
 0x12c   :  { %1256 = vmatprep.mubr.f32.mxu0 %v451_v51  ;;  %v452_v28 = vsub.f32 %v450_v50, %v451_v51  ;;  %1348 = vmatprep.subr.bf16.mxu1 %v1893_v32  ;;  %v462_v63 = vsub.f32 %v460_v47, %v461_v62 }
 0x12d   :  { %1257 = vmatmul.mubr.f32.gmra.mrb[2].mxu0 %v461_v62  ;;  %1412 = vmatprep.subr.bf16.mxu0 %v1701_v52 }
 0x12e   :  { %1279 = vmatprep.mubr.f32.mxu0 %v1942_v15  ;;  %v453_v6 = vand.u32 4294901760, %v452_v28  ;;  %v463_v4 = vand.u32 4294901760, %v462_v63 }
 0x12f   :  { %1350 = vmatpush3.bf16.msra.mxu1 %v1893_v32 }
 0x130   :  { %1178 = vmatprep.mubr.f32.mxu1 %v453_v6  ;;  %1352 = vmatprep.subr.bf16.mxu1 %v1898_v2 }
 0x131   :  { %1179 = vmatmul.mubr.f32.gmra.mrb[2].mxu1 %v463_v4  ;;  %1280 = vmatmul.mubr.f32.vlgmr.msra.gmra.mrb[0].mxu0 %v1940_v8 }
 0x132   :  { %1414 = vmatpush3.bf16.msra.mxu0 %v1701_v52  ;;  %1201 = vmatprep.mubr.f32.mxu1 %v1942_v15  ;;  %v1359_v52 = vpack.c.bf16 %v1934_v54, %v1929_v40 }
 0x133   :  { %1282 = vmatprep.mubr.f32.mxu0 %v449_v38  ;;  %1416 = vmatprep.subr.bf16.mxu0 %v1725_v58 }
 0x135   :  { %1202 = vmatmul.mubr.f32.vlgmr.msra.gmra.mrb[0].mxu1 %v1940_v8  ;;  %1283 = vmatmul.mubr.f32.gmra.mrb[2].mxu0 %v459_v46 }
 0x136   :  { %1354 = vmatpush3.bf16.msra.mxu1 %v1898_v2  ;;  %1418 = vmatpush3.bf16.msra.mxu0 %v1725_v58 }
 0x137   :  { %1204 = vmatprep.mubr.f32.mxu1 %v449_v38  ;;  %1305 = vmatprep.mubr.f32.mxu0 %v1942_v15 }
 0x138   :  { %1356 = vmatprep.subr.bf16.mxu1 %v1355_v19  ;;  %1420 = vmatprep.subr.bf16.mxu0 %v1739_v61 }
 0x139   :  { %1205 = vmatmul.mubr.f32.gmra.mrb[2].mxu1 %v459_v46 }
 0x13a   :  { %1358 = vmatpush3.bf16.msra.mxu1 %v1355_v19  ;;  %1422 = vmatpush3.bf16.msra.mxu0 %v1739_v61 }
 0x13b   :  { %1227 = vmatprep.mubr.f32.mxu1 %v1952_v0  ;;  %1360 = vmatprep.subr.bf16.mxu1 %v1359_v52 }
 0x13c   :  { %1424 = vmatprep.subr.bf16.mxu0 %v1774_v10 }
 0x13e   :  { %1362 = vmatpush3.bf16.msra.mxu1 %v1359_v52  ;;  %1426 = vmatpush3.bf16.msra.mxu0 %v1774_v10 }
 0x13f   :  { %1364 = vmatprep.subr.bf16.mxu1 %v1900_v33  ;;  %1428 = vmatprep.subr.bf16.mxu0 %v1800_v20 }
 0x142   :  { %1366 = vmatpush3.bf16.msra.mxu1 %v1900_v33  ;;  %1430 = vmatpush3.bf16.msra.mxu0 %v1800_v20 }
 0x143   :  { %1368 = vmatprep.subr.bf16.mxu1 %v1902_v35 }
 0x145   :  { %1306 = vmatmul.mubr.f32.vlgmr.msra.gmra.mrb[0].mxu0 %v1940_v8 }
 0x146   :  { %1370 = vmatpush3.bf16.msra.mxu1 %v1902_v35  ;;  %1308 = vmatprep.mubr.f32.mxu0 %v449_v38 }
 0x149   :  { %1228 = vmatmul.mubr.f32.vlgmr.msra.gmra.mrb[0].mxu1 %v1949_v60  ;;  %1309 = vmatmul.mubr.f32.gmra.mrb[2].mxu0 %v459_v46 }
 0x14a   :  { %1230 = vmatprep.mubr.f32.mxu1 %v450_v50 }
 0x14d   :  { %1231 = vmatmul.mubr.f32.gmra.mrb[2].mxu1 %v460_v47 }
 0x218   :  { %v1307_v58 = vpop.f32.mrb[0].mxu0 }
 0x219   :  { %v1024_v61 = vpop.f32.mrb[1].mxu0 }
 0x21c   :  { %v1229_v10 = vpop.f32.mrb[0].mxu1  ;;  %v1310_v12 = vpop.f32.mrb[2].mxu0 }
 0x21d   :  { %v1431_v32 = vadd.f32 %v1307_v58, %v1229_v10  ;;  %v696_v2 = vpop.f32.mrb[1].mxu1  ;;  %v1036_v20 = vpop.f32.mrb[3].mxu0 }
 0x21e   :  { %v1432_v33 = vadd.f32 %v1024_v61, %v696_v2 }
 0x21f   :  { %1048 = vst.msk [vmem:[#allocation2 + $0x8] sm:$0xff] %vm1046_vm14, %v1431_v32 }
 0x220   :  { %1047 = vst.msk [vmem:[#allocation2] sm:$0xff] %vm1046_vm14, %v1432_v33  ;;  %v1232_v35 = vpop.f32.mrb[2].mxu1 }
 0x221   :  { %v1433_v53 = vadd.f32 %v1310_v12, %v1232_v35  ;;  %v710_v24 = vpop.f32.mrb[3].mxu1 }
 0x222   :  { %v1434_v40 = vadd.f32 %v1036_v20, %v710_v24 }
 0x223   :  { %1050 = vst.msk [vmem:[#allocation2 + $0x18] sm:$0xff] %vm1046_vm14, %v1433_v53 }
 0x224   :  { %1049 = vst.msk [vmem:[#allocation2 + $0x10] sm:$0xff] %vm1046_vm14, %v1434_v40 }
 0x225   :  { %1514 = shalt.err (!%p1511_p4)
}
 0x226   :  { %s1515_s25 = scalar_lea.hbm %s2032_s3, 512 }
 0x227   :  { %p1516_p5 = scmp.ne.s32.totalorder %s2032_s3, %s1515_s25  ;;  %p1519_p6 = scmp.lt.u32.totalorder %s1515_s25, %s2032_s3 }
 0x229   :  { %p1521_p7 = pnand %p1519_p6, %p1516_p5 }
 0x22b   :  { %1524 = shalt.err (!%p1521_p7)
}
 0x22c   :  { %s1535_s30 = smov 128  }
 0x22d   :  { %1062 = dma.vmem_to_hbm [thread:$0]  %s1057_s21, 512, %s2032_s3, [#allocation3], %s1535_s30, %s1535_s30, %s1531_s27  }
 0x22e   :  { %1525 = dma.done.wait [#allocation3], 512  }
 0x22f   :  { %1526 = vsyncadd [#allocation3], 4294966784 }
 0x230   :  { %1066 = vsyncpa [#allocation3], 1 }

</bundles_post_ra>
